<compile_context>
chip_gen: v7x
topology: tpu7x:2x2x1
jax: 0.10.0
libtpu: 0.0.40
codegen_flags: <defaults>
</compile_context>

<pallas_src>
import functools

import jax
import jax.numpy as jnp
from jax.experimental import pallas as pl
from jax.experimental.pallas import tpu as pltpu

LANE = 128      # TPU lane width (last dim)
SUBLANE = 8     # TPU sublane width (second-to-last dim, f32)


def _round_up(x, m):
    return ((x + m - 1) // m) * m


# --------------------- fused RNN (+ optional Linear) kernels --------------------- #
def _rnn_fused_fc_kernel(x_ref, wih_t_ref, whh_t_ref, b_ref, wfc_t_ref, bfc_ref,
                         out_ref, z_scr, *, T, BP):
    """Full recurrence + final Linear, single invocation.

    x_ref:     (T*BP, I)    time-major input, batch padded to BP
    wih_t_ref: (I, HP)      W_ih^T, zero-padded to HP lanes
    whh_t_ref: (HP, HP)     W_hh^T, zero-padded
    b_ref:     (1, HP)      b_ih + b_hh, zero-padded
    wfc_t_ref: (HP, OP)     W_fc^T, zero-padded
    bfc_ref:   (1, OP)      b_fc, zero-padded
    out_ref:   (BP, OP)     linear(h_T)
    z_scr:     (T*BP, HP)   VMEM scratch for the hoisted input projection
    """
    HP = whh_t_ref.shape[0]

    # Hoisted, time-independent input projection: one lane-dense matmul + one bias
    # broadcast, done once outside the serial recurrence.
    z_scr[...] = (jnp.dot(x_ref[...], wih_t_ref[...],
                          preferred_element_type=jnp.float32) + b_ref[...])

    whh_t = whh_t_ref[...]
    h = jnp.zeros((BP, HP), jnp.float32)

    # T is a small compile-time constant -> static, fully-unrolled loop with static
    # sublane-aligned slices into the scratch.
    for t in range(T):
        z_t = z_scr[pl.ds(t * BP, BP), :]                       # (BP, HP), static start
        h = jnp.tanh(z_t + jnp.dot(h, whh_t, preferred_element_type=jnp.float32))

    out_ref[...] = (jnp.dot(h, wfc_t_ref[...],
                            preferred_element_type=jnp.float32)
                    + bfc_ref[...]).astype(out_ref.dtype)


def _rnn_seq_kernel(x_ref, wih_t_ref, whh_t_ref, b_ref, out_ref, z_scr, *, T, BP):
    """Full recurrence, writes the whole hidden sequence (for stacked layers).

    x_ref: (T*BP, I_in)   out_ref: (T*BP, HP)   z_scr: (T*BP, HP)
    """
    HP = whh_t_ref.shape[0]
    z_scr[...] = (jnp.dot(x_ref[...], wih_t_ref[...],
                          preferred_element_type=jnp.float32) + b_ref[...])
    whh_t = whh_t_ref[...]
    h = jnp.zeros((BP, HP), jnp.float32)
    for t in range(T):
        h = jnp.tanh(z_scr[pl.ds(t * BP, BP), :]
                     + jnp.dot(h, whh_t, preferred_element_type=jnp.float32))
        out_ref[pl.ds(t * BP, BP), :] = h                        # lane-dense unmasked vst


# ------------------------------- pallas_call wrappers ----------------------------- #
def rnn_layer_seq(x2d, wih_t, whh_t, b, *, T, BP):
    TB, I = x2d.shape
    HP = whh_t.shape[0]
    kernel = functools.partial(_rnn_seq_kernel, T=T, BP=BP)
    return pl.pallas_call(
        kernel,
        out_shape=jax.ShapeDtypeStruct((TB, HP), jnp.float32),
        grid=(1,),
        in_specs=[
            pl.BlockSpec((TB, I), lambda i: (0, 0)),
            pl.BlockSpec((I, HP), lambda i: (0, 0)),
            pl.BlockSpec((HP, HP), lambda i: (0, 0)),
            pl.BlockSpec((1, HP), lambda i: (0, 0)),
        ],
        out_specs=pl.BlockSpec((TB, HP), lambda i: (0, 0)),
        scratch_shapes=[pltpu.VMEM((TB, HP), jnp.float32)],
        compiler_params=pltpu.CompilerParams(dimension_semantics=("arbitrary",)),
    )(x2d, wih_t, whh_t, b)


def rnn_fused_fc(x2d, wih_t, whh_t, b, wfc_t, bfc, *, T, BP):
    TB, I = x2d.shape
    HP = whh_t.shape[0]
    OP = wfc_t.shape[1]
    kernel = functools.partial(_rnn_fused_fc_kernel, T=T, BP=BP)
    return pl.pallas_call(
        kernel,
        out_shape=jax.ShapeDtypeStruct((BP, OP), jnp.float32),
        grid=(1,),
        in_specs=[
            pl.BlockSpec((TB, I), lambda i: (0, 0)),
            pl.BlockSpec((I, HP), lambda i: (0, 0)),
            pl.BlockSpec((HP, HP), lambda i: (0, 0)),
            pl.BlockSpec((1, HP), lambda i: (0, 0)),
            pl.BlockSpec((HP, OP), lambda i: (0, 0)),
            pl.BlockSpec((1, OP), lambda i: (0, 0)),
        ],
        out_specs=pl.BlockSpec((BP, OP), lambda i: (0, 0)),
        scratch_shapes=[pltpu.VMEM((TB, HP), jnp.float32)],
        compiler_params=pltpu.CompilerParams(dimension_semantics=("arbitrary",)),
    )(x2d, wih_t, whh_t, b, wfc_t, bfc)


# ------------------------------------ params --------------------------------------- #
def init_rnn_model_params(key, input_size, hidden_layer_size, output_size,
                          num_layers=1):
    """Deterministic init matching nn.RNN / nn.Linear shapes (uniform +/- 1/sqrt(H))."""
    H = hidden_layer_size
    bound = 1.0 / float(jnp.sqrt(jnp.float32(H)))
    params = {"rnn": [], "fc": None}
    for layer in range(num_layers):
        in_sz = input_size if layer == 0 else H
        key, k1, k2, k3, k4 = jax.random.split(key, 5)
        params["rnn"].append({
            "w_ih": jax.random.uniform(k1, (H, in_sz), jnp.float32, -bound, bound),
            "w_hh": jax.random.uniform(k2, (H, H), jnp.float32, -bound, bound),
            "b_ih": jax.random.uniform(k3, (H,), jnp.float32, -bound, bound),
            "b_hh": jax.random.uniform(k4, (H,), jnp.float32, -bound, bound),
        })
    key, k5, k6 = jax.random.split(key, 3)
    params["fc"] = {
        "w": jax.random.uniform(k5, (output_size, H), jnp.float32, -bound, bound),
        "b": jax.random.uniform(k6, (output_size,), jnp.float32, -bound, bound),
    }
    return params


def prepare_params(params):
    """One-time: transpose weights and zero-pad H/O to lane multiples of 128."""
    H = params["rnn"][0]["w_hh"].shape[0]
    O = params["fc"]["w"].shape[0]
    HP = _round_up(H, LANE)
    OP = _round_up(O, LANE)
    prepared = {"rnn": [], "fc": None, "H": H, "O": O, "HP": HP, "OP": OP}
    for layer, lp in enumerate(params["rnn"]):
        in_sz = lp["w_ih"].shape[1]
        in_pad = in_sz if layer == 0 else HP   # deeper layers consume padded features
        wih_t = jnp.zeros((in_pad, HP), jnp.float32).at[:in_sz, :H].set(
            jnp.transpose(lp["w_ih"]))
        whh_t = jnp.zeros((HP, HP), jnp.float32).at[:H, :H].set(
            jnp.transpose(lp["w_hh"]))
        b = jnp.zeros((1, HP), jnp.float32).at[0, :H].set(lp["b_ih"] + lp["b_hh"])
        prepared["rnn"].append({"wih_t": wih_t, "whh_t": whh_t, "b": b})
    wfc_t = jnp.zeros((HP, OP), jnp.float32).at[:H, :O].set(
        jnp.transpose(params["fc"]["w"]))
    bfc = jnp.zeros((1, OP), jnp.float32).at[0, :O].set(params["fc"]["b"])
    prepared["fc"] = {"wfc_t": wfc_t, "bfc": bfc}
    return prepared


# ------------------------------------ forward --------------------------------------- #
def rnn_model_forward(prepared, input_seq):
    """input_seq: (B, T, input_size) batch-first, like the PyTorch module."""
    B, T, I = input_seq.shape
    BP = _round_up(B, SUBLANE)
    x = jnp.transpose(input_seq, (1, 0, 2)).astype(jnp.float32)   # (T, B, I) time-major
    if BP != B:
        x = jnp.pad(x, ((0, 0), (0, BP - B), (0, 0)))             # pad batch -> sublane
    x2d = x.reshape(T * BP, I)                                    # lane dim untouched

    layers = prepared["rnn"]
    for lp in layers[:-1]:                                        # stacked layers (if any)
        x2d = rnn_layer_seq(x2d, lp["wih_t"], lp["whh_t"], lp["b"], T=T, BP=BP)

    lp = layers[-1]
    out_p = rnn_fused_fc(x2d, lp["wih_t"], lp["whh_t"], lp["b"],
                         prepared["fc"]["wfc_t"], prepared["fc"]["bfc"],
                         T=T, BP=BP)                              # (BP, OP)
    return out_p[:B, :prepared["O"]]                              # (B, output_size)


# -------------------------------- pure-JAX reference --------------------------------- #
def _reference_forward(params, input_seq):
    x = input_seq.astype(jnp.float32)                             # (B, T, I)
    B = x.shape[0]
    h_seq = x
    for lp in params["rnn"]:
        H = lp["w_hh"].shape[0]
        h = jnp.zeros((B, H), jnp.float32)
        outs = []
        for t in range(h_seq.shape[1]):
            h = jnp.tanh(h_seq[:, t] @ lp["w_ih"].T + h @ lp["w_hh"].T
                         + lp["b_ih"] + lp["b_hh"])
            outs.append(h)
        h_seq = jnp.stack(outs, axis=1)
    return h_seq[:, -1] @ params["fc"]["w"].T + params["fc"]["b"]


# ----------------------------------------- main --------------------------------------- #
if __name__ == "__main__":
    B, T, INPUT_SIZE, HIDDEN, OUTPUT_SIZE, NUM_LAYERS = 2, 8, 4, 32, 1, 1

    key = jax.random.PRNGKey(0)
    key, pkey, xkey = jax.random.split(key, 3)
    params = init_rnn_model_params(pkey, INPUT_SIZE, HIDDEN, OUTPUT_SIZE, NUM_LAYERS)
    prepared = prepare_params(params)
    x = jax.random.normal(xkey, (B, T, INPUT_SIZE), jnp.float32)

    out = rnn_model_forward(prepared, x)
    jax.block_until_ready(out)
    assert out.shape == (B, OUTPUT_SIZE), out.shape

    ref = _reference_forward(params, x)
    assert jnp.allclose(out, ref, rtol=1e-3, atol=1e-3), (out, ref)

    print("KERNEL_OK")
</pallas_src>

<mosaic_0001>
module attributes {stable_mosaic.version = 11 : i64} {
  func.func @_rnn_fused_fc_kernel(%arg0: i32, %arg1: memref<64x4xf32, #tpu.memory_space<vmem>>, %arg2: memref<4x128xf32, #tpu.memory_space<vmem>>, %arg3: memref<128x128xf32, #tpu.memory_space<vmem>>, %arg4: memref<1x128xf32, #tpu.memory_space<vmem>>, %arg5: memref<128x128xf32, #tpu.memory_space<vmem>>, %arg6: memref<1x128xf32, #tpu.memory_space<vmem>>, %arg7: memref<8x128xf32, #tpu.memory_space<vmem>>, %arg8: memref<64x128xf32, #tpu.memory_space<vmem>>) attributes {dimension_semantics = [#tpu.dimension_semantics<arbitrary>], iteration_bounds = array<i64: 1>, scalar_prefetch = 0 : i64, scratch_operands = 1 : i64, tpu.core_type = #tpu.core_type<tc>, window_params = [{pipeline_mode = #tpu.pipeline_mode<synchronous>, transform_indices = @transform_0, window_bounds = array<i64: 64, 4>}, {pipeline_mode = #tpu.pipeline_mode<synchronous>, transform_indices = @transform_1, window_bounds = array<i64: 4, 128>}, {pipeline_mode = #tpu.pipeline_mode<synchronous>, transform_indices = @transform_2, window_bounds = array<i64: 128, 128>}, {pipeline_mode = #tpu.pipeline_mode<synchronous>, transform_indices = @transform_3, window_bounds = array<i64: 1, 128>}, {pipeline_mode = #tpu.pipeline_mode<synchronous>, transform_indices = @transform_4, window_bounds = array<i64: 128, 128>}, {pipeline_mode = #tpu.pipeline_mode<synchronous>, transform_indices = @transform_5, window_bounds = array<i64: 1, 128>}, {pipeline_mode = #tpu.pipeline_mode<synchronous>, transform_indices = @transform_6, window_bounds = array<i64: 8, 128>}]} {
    %c0 = arith.constant 0 : index
    %c0_0 = arith.constant 0 : index
    %0 = vector.load %arg1[%c0, %c0_0] : memref<64x4xf32, #tpu.memory_space<vmem>>, vector<64x4xf32>
    %c0_1 = arith.constant 0 : index
    %c0_2 = arith.constant 0 : index
    %1 = vector.load %arg2[%c0_1, %c0_2] : memref<4x128xf32, #tpu.memory_space<vmem>>, vector<4x128xf32>
    %cst = arith.constant dense<0.000000e+00> : vector<64x128xf32>
    %2 = tpu.matmul %0, %1, %cst {dimension_numbers = #tpu.dot_dimension_numbers<[1], [0], [0], [1], [0, 0, 1, 1], [], []>} : vector<64x4xf32>, vector<4x128xf32>, vector<64x128xf32> -> vector<64x128xf32>
    %c0_3 = arith.constant 0 : index
    %c0_4 = arith.constant 0 : index
    %3 = vector.load %arg4[%c0_3, %c0_4] : memref<1x128xf32, #tpu.memory_space<vmem>>, vector<1x128xf32>
    %4 = vector.broadcast %3 : vector<1x128xf32> to vector<64x128xf32>
    %5 = arith.addf %2, %4 : vector<64x128xf32>
    %c0_5 = arith.constant 0 : index
    %c0_6 = arith.constant 0 : index
    %6 = vector.load %arg8[%c0_5, %c0_6] : memref<64x128xf32, #tpu.memory_space<vmem>>, vector<64x128xf32>
    tpu.vector_store %arg8[%c0_5, %c0_6], %5 {strides = array<i32>} : memref<64x128xf32, #tpu.memory_space<vmem>>, vector<64x128xf32>,
    %c0_7 = arith.constant 0 : index
    %c0_8 = arith.constant 0 : index
    %7 = vector.load %arg3[%c0_7, %c0_8] : memref<128x128xf32, #tpu.memory_space<vmem>>, vector<128x128xf32>
    %cst_9 = arith.constant 0.000000e+00 : f32
    %8 = vector.broadcast %cst_9 : f32 to vector<8x128xf32>
    %c0_10 = arith.constant 0 : index
    %c0_11 = arith.constant 0 : index
    %9 = vector.load %arg8[%c0_10, %c0_11] : memref<64x128xf32, #tpu.memory_space<vmem>>, vector<8x128xf32>
    %cst_12 = arith.constant dense<0.000000e+00> : vector<8x128xf32>
    %10 = tpu.matmul %8, %7, %cst_12 {dimension_numbers = #tpu.dot_dimension_numbers<[1], [0], [0], [1], [0, 0, 1, 1], [], []>} : vector<8x128xf32>, vector<128x128xf32>, vector<8x128xf32> -> vector<8x128xf32>
    %11 = arith.addf %9, %10 : vector<8x128xf32>
    %12 = math.tanh %11 : vector<8x128xf32>
    %c8 = arith.constant 8 : index
    %c0_13 = arith.constant 0 : index
    %13 = vector.load %arg8[%c8, %c0_13] : memref<64x128xf32, #tpu.memory_space<vmem>>, vector<8x128xf32>
    %cst_14 = arith.constant dense<0.000000e+00> : vector<8x128xf32>
    %14 = tpu.matmul %12, %7, %cst_14 {dimension_numbers = #tpu.dot_dimension_numbers<[1], [0], [0], [1], [0, 0, 1, 1], [], []>} : vector<8x128xf32>, vector<128x128xf32>, vector<8x128xf32> -> vector<8x128xf32>
    %15 = arith.addf %13, %14 : vector<8x128xf32>
    %16 = math.tanh %15 : vector<8x128xf32>
    %c16 = arith.constant 16 : index
    %c0_15 = arith.constant 0 : index
    %17 = vector.load %arg8[%c16, %c0_15] : memref<64x128xf32, #tpu.memory_space<vmem>>, vector<8x128xf32>
    %cst_16 = arith.constant dense<0.000000e+00> : vector<8x128xf32>
    %18 = tpu.matmul %16, %7, %cst_16 {dimension_numbers = #tpu.dot_dimension_numbers<[1], [0], [0], [1], [0, 0, 1, 1], [], []>} : vector<8x128xf32>, vector<128x128xf32>, vector<8x128xf32> -> vector<8x128xf32>
    %19 = arith.addf %17, %18 : vector<8x128xf32>
    %20 = math.tanh %19 : vector<8x128xf32>
    %c24 = arith.constant 24 : index
    %c0_17 = arith.constant 0 : index
    %21 = vector.load %arg8[%c24, %c0_17] : memref<64x128xf32, #tpu.memory_space<vmem>>, vector<8x128xf32>
    %cst_18 = arith.constant dense<0.000000e+00> : vector<8x128xf32>
    %22 = tpu.matmul %20, %7, %cst_18 {dimension_numbers = #tpu.dot_dimension_numbers<[1], [0], [0], [1], [0, 0, 1, 1], [], []>} : vector<8x128xf32>, vector<128x128xf32>, vector<8x128xf32> -> vector<8x128xf32>
    %23 = arith.addf %21, %22 : vector<8x128xf32>
    %24 = math.tanh %23 : vector<8x128xf32>
    %c32 = arith.constant 32 : index
    %c0_19 = arith.constant 0 : index
    %25 = vector.load %arg8[%c32, %c0_19] : memref<64x128xf32, #tpu.memory_space<vmem>>, vector<8x128xf32>
    %cst_20 = arith.constant dense<0.000000e+00> : vector<8x128xf32>
    %26 = tpu.matmul %24, %7, %cst_20 {dimension_numbers = #tpu.dot_dimension_numbers<[1], [0], [0], [1], [0, 0, 1, 1], [], []>} : vector<8x128xf32>, vector<128x128xf32>, vector<8x128xf32> -> vector<8x128xf32>
    %27 = arith.addf %25, %26 : vector<8x128xf32>
    %28 = math.tanh %27 : vector<8x128xf32>
    %c40 = arith.constant 40 : index
    %c0_21 = arith.constant 0 : index
    %29 = vector.load %arg8[%c40, %c0_21] : memref<64x128xf32, #tpu.memory_space<vmem>>, vector<8x128xf32>
    %cst_22 = arith.constant dense<0.000000e+00> : vector<8x128xf32>
    %30 = tpu.matmul %28, %7, %cst_22 {dimension_numbers = #tpu.dot_dimension_numbers<[1], [0], [0], [1], [0, 0, 1, 1], [], []>} : vector<8x128xf32>, vector<128x128xf32>, vector<8x128xf32> -> vector<8x128xf32>
    %31 = arith.addf %29, %30 : vector<8x128xf32>
    %32 = math.tanh %31 : vector<8x128xf32>
    %c48 = arith.constant 48 : index
    %c0_23 = arith.constant 0 : index
    %33 = vector.load %arg8[%c48, %c0_23] : memref<64x128xf32, #tpu.memory_space<vmem>>, vector<8x128xf32>
    %cst_24 = arith.constant dense<0.000000e+00> : vector<8x128xf32>
    %34 = tpu.matmul %32, %7, %cst_24 {dimension_numbers = #tpu.dot_dimension_numbers<[1], [0], [0], [1], [0, 0, 1, 1], [], []>} : vector<8x128xf32>, vector<128x128xf32>, vector<8x128xf32> -> vector<8x128xf32>
    %35 = arith.addf %33, %34 : vector<8x128xf32>
    %36 = math.tanh %35 : vector<8x128xf32>
    %c56 = arith.constant 56 : index
    %c0_25 = arith.constant 0 : index
    %37 = vector.load %arg8[%c56, %c0_25] : memref<64x128xf32, #tpu.memory_space<vmem>>, vector<8x128xf32>
    %cst_26 = arith.constant dense<0.000000e+00> : vector<8x128xf32>
    %38 = tpu.matmul %36, %7, %cst_26 {dimension_numbers = #tpu.dot_dimension_numbers<[1], [0], [0], [1], [0, 0, 1, 1], [], []>} : vector<8x128xf32>, vector<128x128xf32>, vector<8x128xf32> -> vector<8x128xf32>
    %39 = arith.addf %37, %38 : vector<8x128xf32>
    %40 = math.tanh %39 : vector<8x128xf32>
    %c0_27 = arith.constant 0 : index
    %c0_28 = arith.constant 0 : index
    %41 = vector.load %arg5[%c0_27, %c0_28] : memref<128x128xf32, #tpu.memory_space<vmem>>, vector<128x128xf32>
    %cst_29 = arith.constant dense<0.000000e+00> : vector<8x128xf32>
    %42 = tpu.matmul %40, %41, %cst_29 {dimension_numbers = #tpu.dot_dimension_numbers<[1], [0], [0], [1], [0, 0, 1, 1], [], []>} : vector<8x128xf32>, vector<128x128xf32>, vector<8x128xf32> -> vector<8x128xf32>
    %c0_30 = arith.constant 0 : index
    %c0_31 = arith.constant 0 : index
    %43 = vector.load %arg6[%c0_30, %c0_31] : memref<1x128xf32, #tpu.memory_space<vmem>>, vector<1x128xf32>
    %44 = vector.broadcast %43 : vector<1x128xf32> to vector<8x128xf32>
    %45 = arith.addf %42, %44 : vector<8x128xf32>
    %c0_32 = arith.constant 0 : index
    %c0_33 = arith.constant 0 : index
    %46 = vector.load %arg7[%c0_32, %c0_33] : memref<8x128xf32, #tpu.memory_space<vmem>>, vector<8x128xf32>
    tpu.vector_store %arg7[%c0_32, %c0_33], %45 {strides = array<i32>} : memref<8x128xf32, #tpu.memory_space<vmem>>, vector<8x128xf32>,
    return
  }
  func.func @transform_0(%arg0: i32) -> (i32, i32) {
    %c0_i32 = arith.constant 0 : i32
    %c0_i32_0 = arith.constant 0 : i32
    %c0_i32_1 = arith.constant 0 : i32
    return %c0_i32, %c0_i32_0 : i32, i32
  }
  func.func @transform_1(%arg0: i32) -> (i32, i32) {
    %c0_i32 = arith.constant 0 : i32
    %c0_i32_0 = arith.constant 0 : i32
    %c0_i32_1 = arith.constant 0 : i32
    return %c0_i32, %c0_i32_0 : i32, i32
  }
  func.func @transform_2(%arg0: i32) -> (i32, i32) {
    %c0_i32 = arith.constant 0 : i32
    %c0_i32_0 = arith.constant 0 : i32
    %c0_i32_1 = arith.constant 0 : i32
    return %c0_i32, %c0_i32_0 : i32, i32
  }
  func.func @transform_3(%arg0: i32) -> (i32, i32) {
    %c0_i32 = arith.constant 0 : i32
    %c0_i32_0 = arith.constant 0 : i32
    %c0_i32_1 = arith.constant 0 : i32
    return %c0_i32, %c0_i32_0 : i32, i32
  }
  func.func @transform_4(%arg0: i32) -> (i32, i32) {
    %c0_i32 = arith.constant 0 : i32
    %c0_i32_0 = arith.constant 0 : i32
    %c0_i32_1 = arith.constant 0 : i32
    return %c0_i32, %c0_i32_0 : i32, i32
  }
  func.func @transform_5(%arg0: i32) -> (i32, i32) {
    %c0_i32 = arith.constant 0 : i32
    %c0_i32_0 = arith.constant 0 : i32
    %c0_i32_1 = arith.constant 0 : i32
    return %c0_i32, %c0_i32_0 : i32, i32
  }
  func.func @transform_6(%arg0: i32) -> (i32, i32) {
    %c0_i32 = arith.constant 0 : i32
    %c0_i32_0 = arith.constant 0 : i32
    %c0_i32_1 = arith.constant 0 : i32
    return %c0_i32, %c0_i32_0 : i32, i32
  }
}

</mosaic_0001>

<bundles_post_ra>
// kernel: tpu_custom_call.1
= control target key start
LH: loop header
LB: loop body
LE: loop exit
PB: predicated region body
PF: predicated region fallthrough
CT: control target
= control target key end

     0   :  { %11 = vsyncpa [#allocation4], 0  ;;  %s2047_s0 = inlined_call_operand.vmem [shape: f32[64,4], index: 0, kind: input, shape index: {}]   ;;  %s2048_s1 = inlined_call_operand.vmem [shape: f32[4,128], index: 1, kind: input, shape index: {}]   ;;  %s2049_s2 = inlined_call_operand.hbm [shape: f32[128,128], index: 2, kind: input, shape index: {}]   ;;  %s2050_s3 = inlined_call_operand.vmem [shape: f32[1,128], index: 3, kind: input, shape index: {}]   ;;  %s2051_s4 = inlined_call_operand.hbm [shape: f32[128,128], index: 4, kind: input, shape index: {}]   ;;  %s2052_s5 = inlined_call_operand.vmem [shape: f32[1,128], index: 5, kind: input, shape index: {}]   ;;  %s2053_s6 = inlined_call_operand.hbm [shape: f32[8,128], index: 6, kind: output, shape index: {}]  }
   0x1   :  { %12 = vsyncpa [#allocation7], 0 }
   0x2   :  { %13 = vsyncpa [#allocation5], 0  ;;  %s1734_s21 = smov [#allocation3]   ;;  %s1662_s25 = scalar_lea.hbm %s2049_s2, 2048 }
   0x3   :  { %s23_s22 = sshll.u32 %s1734_s21, 4  ;;  %p1663_p0 = scmp.ne.s32.totalorder %s2049_s2, %s1662_s25  ;;  %s24_s22 = int_to_ptr.vmem [resolvable:$true] %s23_s22 }
   0x4   :  { %p1666_p1 = scmp.lt.u32.totalorder %s1662_s25, %s2049_s2 }
   0x6   :  { %p1668_p2 = pnand %p1666_p1, %p1663_p0 }
   0x8   :  { %1671 = shalt.err (!%p1668_p2)
}
   0x9   :  { %s1672_s30 = scalar_lea.vmem %s24_s22, 2048  ;;  %p1677_p4 = scmp.lt.s32.totalorder %s24_s22, %s24_s22 }
   0xa   :  { %p1673_p3 = scmp.ne.s32.totalorder %s24_s22, %s1672_s30  ;;  %p1678_p5 = scmp.lt.s32.totalorder %s1672_s30, %s1672_s30 }
   0xc   :  { %p1679_p6 = por %p1678_p5, %p1677_p4 }
   0xe   :  { %p1680_p7 = pnand %p1679_p6, %p1673_p3 }
  0x10   :  { %1683 = shalt.err (!%p1680_p7)
}
  0x11   :  { %s1735_s7 = smov 128   ;;  %s1736_s8 = smov 8  }
  0x12   :  { %29 = dma.hbm_to_vmem [thread:$0]  %s2049_s2, 2048, %s24_s22, [#allocation4], %s1735_s7, %s1735_s7, %s1736_s8  }
  0x13   :  { %s1737_s11 = smov [#allocation6]   ;;  %s1684_s15 = scalar_lea.hbm %s2051_s4, 2048 }
  0x14   :  { %s37_s12 = sshll.u32 %s1737_s11, 4  ;;  %p1685_p8 = scmp.ne.s32.totalorder %s2051_s4, %s1684_s15  ;;  %s38_s12 = int_to_ptr.vmem [resolvable:$true] %s37_s12 }
  0x15   :  { %p1688_p9 = scmp.lt.u32.totalorder %s1684_s15, %s2051_s4 }
  0x17   :  { %p1690_p10 = pnand %p1688_p9, %p1685_p8 }
  0x19   :  { %1693 = shalt.err (!%p1690_p10)
}
  0x1a   :  { %s1694_s20 = scalar_lea.vmem %s38_s12, 2048  ;;  %p1699_p12 = scmp.lt.s32.totalorder %s38_s12, %s38_s12 }
  0x1b   :  { %p1695_p11 = scmp.ne.s32.totalorder %s38_s12, %s1694_s20  ;;  %p1700_p13 = scmp.lt.s32.totalorder %s1694_s20, %s1694_s20 }
  0x1d   :  { %p1701_p0 = por %p1700_p13, %p1699_p12 }
  0x1f   :  { %p1702_p1 = pnand %p1701_p0, %p1695_p11 }
  0x21   :  { %1705 = shalt.err (!%p1702_p1)
}
  0x22   :  { %43 = dma.hbm_to_vmem [thread:$0]  %s2051_s4, 2048, %s38_s12, [#allocation7], %s1735_s7, %s1735_s7, %s1736_s8  }
  0x23   :  { %1728 = dma.done.wait [#allocation4], 2048  }
  0x24   :  { %1729 = vsyncadd [#allocation4], 4294965248 }
  0x25   :  { %1730 = dma.done.wait [#allocation7], 2048  }
  0x26   :  { %1731 = vsyncadd [#allocation7], 4294965248  ;;  %v1738_v0 = vmov 0.0|0.0   ;;  %vm1739_vm0 = vmmov 0   ;;  %v1740_v1 = vmov 0.0   ;;  %v210_v2 = vld [vmem:[#allocation3] sm:$0xff] }
  0x27   :  { %1422 = vmatprep.subr.bf16.mxu1 %v1738_v0  ;;  %1139 = vmatprep.mubr.msk.f32.mxu1 %vm1739_vm0, %v1740_v1  ;;  %v211_v3 = vld [vmem:[#allocation3 + $0x8] sm:$0xff]  ;;  %v212_v4 = vld [vmem:[#allocation3 + $0x10] sm:$0xff]  ;;  %v213_v6 = vld [vmem:[#allocation3 + $0x18] sm:$0xff]  ;;  %vm93_vm1 = vcmask 1043456   ;;  %vm68_vm2 = vcmask 31744   ;;  %s1741_s16 = smov [#allocation8]  }
  0x28   :  { %v1804_v5 = vpack.c.bf16 %v211_v3, %v210_v2  ;;  %v1807_v7 = vpack.c.bf16 %v213_v6, %v212_v4  ;;  %v214_v8 = vld [vmem:[#allocation3 + $0x20] sm:$0xff]  ;;  %v215_v9 = vld [vmem:[#allocation3 + $0x28] sm:$0xff]  ;;  %v216_v14 = vld [vmem:[#allocation3 + $0x30] sm:$0xff]  ;;  %s910_s17 = sshll.u32 %s1741_s16, 4  ;;  %s911_s17 = int_to_ptr.vmem [resolvable:$true] %s910_s17 }
  0x29   :  { %v60_v10 = vld [vmem:[%s2048_s1] sm:$0xf]  ;;  %v53_v12 = vld [vmem:[%s2047_s0 + $0x8] sm:$0xff]  ;;  %v1821_v13 = vpack.c.bf16 %v215_v9, %v214_v8  ;;  %v217_v15 = vld [vmem:[#allocation3 + $0x38] sm:$0xff]  ;;  %s1706_s18 = scalar_lea.vmem %s911_s17, 128  ;;  %p1711_p3 = scmp.lt.s32.totalorder %s911_s17, %s911_s17 }
  0x2a   :  { %1424 = vmatpush3.bf16.msra.mxu1 %v1804_v5  ;;  %1093 = vmatprep.subr.msk.mxu0 %vm93_vm1, %v60_v10  ;;  %v52_v11 = vld [vmem:[%s2047_s0] sm:$0xff]  ;;  %v1829_v16 = vpack.c.bf16 %v217_v15, %v216_v14  ;;  %v219_v18 = vld [vmem:[#allocation3 + $0x48] sm:$0xff]  ;;  %v220_v20 = vld [vmem:[#allocation3 + $0x50] sm:$0xff]  ;;  %p1707_p2 = scmp.ne.s32.totalorder %s911_s17, %s1706_s18  ;;  %p1712_p4 = scmp.lt.s32.totalorder %s1706_s18, %s1706_s18 }
  0x2b   :  { %1425 = vmatprep.subr.bf16.mxu1 %v1738_v0  ;;  %1094 = vmatpush3.msk.msra.mxu0 %vm93_vm1, %v60_v10  ;;  %v218_v17 = vld [vmem:[#allocation3 + $0x40] sm:$0xff]  ;;  %v221_v21 = vld [vmem:[#allocation3 + $0x58] sm:$0xff]  ;;  %v223_v24 = vld [vmem:[#allocation3 + $0x68] sm:$0xff] }
  0x2c   :  { %1095 = vmatprep.mubr.msk.f32.mxu0 %vm68_vm2, %v52_v11  ;;  %1446 = vmatprep.subr.bf16.mxu0 %v1738_v0  ;;  %v1835_v19 = vpack.c.bf16 %v219_v18, %v218_v17  ;;  %v1841_v22 = vpack.c.bf16 %v221_v21, %v220_v20  ;;  %v222_v23 = vld [vmem:[#allocation3 + $0x60] sm:$0xff]  ;;  %v224_v26 = vld [vmem:[#allocation3 + $0x70] sm:$0xff]  ;;  %v225_v27 = vld [vmem:[#allocation3 + $0x78] sm:$0xff]  ;;  %p1713_p5 = por %p1712_p4, %p1711_p3 }
  0x2d   :  { %1096 = vmatmul.mubr.msk.f32.vlgmr.msra.gmra.mrb[0].mxu0 %vm68_vm2, %v53_v12  ;;  %v1847_v25 = vpack.c.bf16 %v223_v24, %v222_v23  ;;  %v1853_v28 = vpack.c.bf16 %v225_v27, %v224_v26  ;;  %v54_v29 = vld [vmem:[%s2047_s0 + $0x10] sm:$0xff]  ;;  %v55_v30 = vld [vmem:[%s2047_s0 + $0x18] sm:$0xff]  ;;  %v56_v31 = vld [vmem:[%s2047_s0 + $0x20] sm:$0xff] }
  0x2e   :  { %1427 = vmatpush3.bf16.msra.mxu1 %v1807_v7  ;;  %1448 = vmatpush3.bf16.msra.mxu0 %v1804_v5  ;;  %v57_v32 = vld [vmem:[%s2047_s0 + $0x28] sm:$0xff]  ;;  %v58_v33 = vld [vmem:[%s2047_s0 + $0x30] sm:$0xff]  ;;  %v59_v34 = vld [vmem:[%s2047_s0 + $0x38] sm:$0xff]  ;;  %p1714_p6 = pnand %p1713_p5, %p1707_p2 }
  0x2f   :  { %1428 = vmatprep.subr.bf16.mxu1 %v1738_v0  ;;  %1449 = vmatprep.subr.bf16.mxu0 %v1738_v0  ;;  %v1912_v37 = vld [vmem:[%s2050_s3] ss:$0 sm:$0xff]  ;;  %v812_v14 = vld [vmem:[#allocation6 + $0x10] sm:$0xff]  ;;  %v819_v24 = vld [vmem:[#allocation6 + $0x48] sm:$0xff] }
  0x30   :  { %1098 = vmatprep.mubr.msk.f32.mxu0 %vm68_vm2, %v54_v29  ;;  %v810_v12 = vld [vmem:[#allocation6] sm:$0xff]  ;;  %v816_v21 = vld [vmem:[#allocation6 + $0x30] sm:$0xff] }
  0x31   :  { %1099 = vmatmul.mubr.msk.f32.gmra.mrb[2].mxu0 %vm68_vm2, %v55_v30  ;;  %v814_v18 = vld [vmem:[#allocation6 + $0x20] sm:$0xff] }
  0x32   :  { %1430 = vmatpush3.bf16.msra.mxu1 %v1821_v13  ;;  %1451 = vmatpush3.bf16.msra.mxu0 %v1807_v7 }
  0x33   :  { %1431 = vmatprep.subr.bf16.mxu1 %v1738_v0  ;;  %1452 = vmatprep.subr.bf16.mxu0 %v1738_v0 }
  0x34   :  { %1101 = vmatprep.mubr.msk.f32.mxu0 %vm68_vm2, %v56_v31  ;;  %v820_v31 = vld [vmem:[#allocation6 + $0x50] sm:$0xff] }
  0x35   :  { %1102 = vmatmul.mubr.msk.f32.gmra.mrb[4].mxu0 %vm68_vm2, %v57_v32  ;;  %v821_v32 = vld [vmem:[#allocation6 + $0x58] sm:$0xff] }
  0x36   :  { %1433 = vmatpush3.bf16.msra.mxu1 %v1829_v16  ;;  %1454 = vmatpush3.bf16.msra.mxu0 %v1821_v13 }
  0x37   :  { %1434 = vmatprep.subr.bf16.mxu1 %v1738_v0  ;;  %1455 = vmatprep.subr.bf16.mxu0 %v1738_v0 }
  0x38   :  { %1104 = vmatprep.mubr.msk.f32.mxu0 %vm68_vm2, %v58_v33  ;;  %v1630_v33 = vpack.c.bf16 %v821_v32, %v820_v31 }
  0x39   :  { %1105 = vmatmul.mubr.msk.f32.gmra.mrb[6].mxu0 %vm68_vm2, %v59_v34  ;;  %v822_v34 = vld [vmem:[#allocation6 + $0x60] sm:$0xff] }
  0x3a   :  { %1436 = vmatpush3.bf16.msra.mxu1 %v1835_v19  ;;  %1457 = vmatpush3.bf16.msra.mxu0 %v1829_v16 }
  0x3b   :  { %1437 = vmatprep.subr.bf16.mxu1 %v1738_v0  ;;  %1458 = vmatprep.subr.bf16.mxu0 %v1738_v0 }
  0x3c   :  { %1174 = vmatprep.mubr.msk.f32.mxu0 %vm1739_vm0, %v1740_v1 }
  0x3e   :  { %1439 = vmatpush3.bf16.msra.mxu1 %v1841_v22  ;;  %1460 = vmatpush3.bf16.msra.mxu0 %v1835_v19 }
  0x3f   :  { %1440 = vmatprep.subr.bf16.mxu1 %v1738_v0  ;;  %1461 = vmatprep.subr.bf16.mxu0 %v1738_v0 }
  0x42   :  { %1442 = vmatpush3.bf16.msra.mxu1 %v1847_v25  ;;  %1463 = vmatpush3.bf16.msra.mxu0 %v1841_v22 }
  0x43   :  { %1443 = vmatprep.subr.bf16.mxu1 %v1738_v0  ;;  %1464 = vmatprep.subr.bf16.mxu0 %v1738_v0 }
  0x46   :  { %1445 = vmatpush3.bf16.msra.mxu1 %v1853_v28  ;;  %1466 = vmatpush3.bf16.msra.mxu0 %v1847_v25 }
  0x47   :  { %1470 = vmatprep.subr.bf16.mxu1 %v1738_v0  ;;  %1467 = vmatprep.subr.bf16.mxu0 %v1738_v0 }
  0x49   :  { %1140 = vmatmul.mubr.f32.vlgmr.msra.gmra.mrb[0].mxu1 %v1740_v1 }
  0x4a   :  { %1472 = vmatpush3.bf16.msra.mxu1 %v1804_v5  ;;  %1209 = vmatprep.mubr.msk.f32.mxu1 %vm1739_vm0, %v1740_v1 }
  0x4b   :  { %1473 = vmatprep.subr.bf16.mxu1 %v1738_v0  ;;  %1469 = vmatpush3.bf16.msra.mxu0 %v1853_v28 }
  0x4c   :  { %1494 = vmatprep.subr.bf16.mxu0 %v1738_v0 }
  0x4e   :  { %1475 = vmatpush3.bf16.msra.mxu1 %v1807_v7 }
  0x4f   :  { %1476 = vmatprep.subr.bf16.mxu1 %v1738_v0 }
  0x52   :  { %1478 = vmatpush3.bf16.msra.mxu1 %v1821_v13 }
  0x53   :  { %1479 = vmatprep.subr.bf16.mxu1 %v1738_v0 }
  0x56   :  { %1481 = vmatpush3.bf16.msra.mxu1 %v1829_v16 }
  0x57   :  { %1482 = vmatprep.subr.bf16.mxu1 %v1738_v0 }
  0x5a   :  { %1484 = vmatpush3.bf16.msra.mxu1 %v1835_v19 }
  0x5b   :  { %1485 = vmatprep.subr.bf16.mxu1 %v1738_v0 }
  0x5e   :  { %1487 = vmatpush3.bf16.msra.mxu1 %v1841_v22 }
  0x5f   :  { %1488 = vmatprep.subr.bf16.mxu1 %v1738_v0 }
  0x62   :  { %1490 = vmatpush3.bf16.msra.mxu1 %v1847_v25 }
  0x63   :  { %1491 = vmatprep.subr.bf16.mxu1 %v1738_v0 }
  0x66   :  { %1493 = vmatpush3.bf16.msra.mxu1 %v1853_v28 }
  0x67   :  { %1518 = vmatprep.subr.bf16.mxu1 %v1738_v0 }
 0x100   :  { %v1097_v35 = vpop.f32.mrb[0].mxu0 }
 0x101   :  { %v163_v36 = vpop.f32.mrb[1].mxu0  ;;  %v169_v49 = vadd.f32 %v1097_v35, %v1912_v37  ;;  %v823_v35 = vld [vmem:[#allocation6 + $0x68] sm:$0xff] }
 0x102   :  { %v164_v38 = vadd.f32 %v1912_v37, %v163_v36  ;;  %v1633_v36 = vpack.c.bf16 %v823_v35, %v822_v34 }
 0x104   :  { %v1100_v43 = vpop.f32.mrb[2].mxu0 }
 0x105   :  { %v173_v44 = vpop.f32.mrb[3].mxu0  ;;  %v179_v59 = vadd.f32 %v1100_v43, %v1912_v37 }
 0x106   :  { %v174_v54 = vadd.f32 %v1912_v37, %v173_v44 }
 0x108   :  { %v1933_v45 = vpop.f32.mrb[4].mxu0 }
 0x109   :  { %v1935_v46 = vpop.f32.mrb[5].mxu0 }
 0x10a   :  { %v184_v2 = vadd.f32 %v1912_v37, %v1935_v46  ;;  %v930_v46 = vld [vmem:[%s2052_s5] ss:$0 sm:$0xff] }
 0x10c   :  { %v1937_v47 = vpop.f32.mrb[6].mxu0 }
 0x10d   :  { %v1939_v48 = vpop.f32.mrb[7].mxu0 }
 0x10e   :  { %v194_v26 = vadd.f32 %v1912_v37, %v1939_v48 }
 0x11c   :  { %v293_v39 = vpop.f32.mrb[0].mxu1 }
 0x11d   :  { %v297_v40 = vadd.f32 %v293_v39, %v164_v38  ;;  %v1141_v41 = vpop.f32.mrb[1].mxu1  ;;  %v824_v38 = vld [vmem:[#allocation6 + $0x70] sm:$0xff]  ;;  %v825_v39 = vld [vmem:[#allocation6 + $0x78] sm:$0xff] }
 0x11e   :  { %v199_v41 = vadd.f32 %v1937_v47, %v1912_v37 }
 0x11f   :  { %1646 = vtanh.f32 %v297_v40  ;;  %v1636_v40 = vpack.c.bf16 %v825_v39, %v824_v38 }
 0x129   :  { %v1647_v42 = vpop.eup %1646 }
 0x12a   :  { %1175 = vmatmul.mubr.f32.vlgmr.msra.gmra.mrb[8].mxu0 %v1647_v42 }
 0x12b   :  { %1496 = vmatpush3.bf16.msra.mxu0 %v1804_v5  ;;  %1244 = vmatprep.mubr.msk.f32.mxu0 %vm1739_vm0, %v1740_v1 }
 0x12c   :  { %1497 = vmatprep.subr.bf16.mxu0 %v1738_v0 }
 0x12f   :  { %1499 = vmatpush3.bf16.msra.mxu0 %v1807_v7 }
 0x130   :  { %1500 = vmatprep.subr.bf16.mxu0 %v1738_v0 }
 0x133   :  { %1502 = vmatpush3.bf16.msra.mxu0 %v1821_v13 }
 0x134   :  { %1503 = vmatprep.subr.bf16.mxu0 %v1738_v0 }
 0x137   :  { %1505 = vmatpush3.bf16.msra.mxu0 %v1829_v16 }
 0x138   :  { %1506 = vmatprep.subr.bf16.mxu0 %v1738_v0 }
 0x13b   :  { %1508 = vmatpush3.bf16.msra.mxu0 %v1835_v19 }
 0x13c   :  { %1509 = vmatprep.subr.bf16.mxu0 %v1738_v0 }
 0x13f   :  { %1511 = vmatpush3.bf16.msra.mxu0 %v1841_v22 }
 0x140   :  { %1512 = vmatprep.subr.bf16.mxu0 %v1738_v0 }
 0x143   :  { %1514 = vmatpush3.bf16.msra.mxu0 %v1847_v25 }
 0x144   :  { %1515 = vmatprep.subr.bf16.mxu0 %v1738_v0 }
 0x147   :  { %1517 = vmatpush3.bf16.msra.mxu0 %v1853_v28 }
 0x148   :  { %1542 = vmatprep.subr.bf16.mxu0 %v1738_v0 }
 0x1fd   :  { %v366_v50 = vpop.f32.mrb[8].mxu0 }
 0x1fe   :  { %v370_v51 = vadd.f32 %v366_v50, %v169_v49  ;;  %v1176_v52 = vpop.f32.mrb[9].mxu0 }
 0x200   :  { %1648 = vtanh.f32 %v370_v51 }
 0x20a   :  { %v1649_v53 = vpop.eup %1648 }
 0x20b   :  { %1210 = vmatmul.mubr.f32.vlgmr.msra.gmra.mrb[2].mxu1 %v1649_v53 }
 0x20c   :  { %1520 = vmatpush3.bf16.msra.mxu1 %v1804_v5  ;;  %1279 = vmatprep.mubr.msk.f32.mxu1 %vm1739_vm0, %v1740_v1 }
 0x20d   :  { %1521 = vmatprep.subr.bf16.mxu1 %v1738_v0 }
 0x210   :  { %1523 = vmatpush3.bf16.msra.mxu1 %v1807_v7 }
 0x211   :  { %1524 = vmatprep.subr.bf16.mxu1 %v1738_v0 }
 0x214   :  { %1526 = vmatpush3.bf16.msra.mxu1 %v1821_v13 }
 0x215   :  { %1527 = vmatprep.subr.bf16.mxu1 %v1738_v0 }
 0x218   :  { %1529 = vmatpush3.bf16.msra.mxu1 %v1829_v16 }
 0x219   :  { %1530 = vmatprep.subr.bf16.mxu1 %v1738_v0 }
 0x21c   :  { %1532 = vmatpush3.bf16.msra.mxu1 %v1835_v19 }
 0x21d   :  { %1533 = vmatprep.subr.bf16.mxu1 %v1738_v0 }
 0x220   :  { %1535 = vmatpush3.bf16.msra.mxu1 %v1841_v22 }
 0x221   :  { %1536 = vmatprep.subr.bf16.mxu1 %v1738_v0 }
 0x224   :  { %1538 = vmatpush3.bf16.msra.mxu1 %v1847_v25 }
 0x225   :  { %1539 = vmatprep.subr.bf16.mxu1 %v1738_v0 }
 0x228   :  { %1541 = vmatpush3.bf16.msra.mxu1 %v1853_v28 }
 0x229   :  { %1566 = vmatprep.subr.bf16.mxu1 %v1738_v0 }
 0x2de   :  { %v439_v55 = vpop.f32.mrb[2].mxu1 }
 0x2df   :  { %v443_v56 = vadd.f32 %v439_v55, %v174_v54  ;;  %v1211_v57 = vpop.f32.mrb[3].mxu1 }
 0x2e1   :  { %1650 = vtanh.f32 %v443_v56 }
 0x2eb   :  { %v1651_v58 = vpop.eup %1650 }
 0x2ec   :  { %1245 = vmatmul.mubr.f32.vlgmr.msra.gmra.mrb[10].mxu0 %v1651_v58 }
 0x2ed   :  { %1544 = vmatpush3.bf16.msra.mxu0 %v1804_v5  ;;  %1314 = vmatprep.mubr.msk.f32.mxu0 %vm1739_vm0, %v1740_v1 }
 0x2ee   :  { %1545 = vmatprep.subr.bf16.mxu0 %v1738_v0 }
 0x2f1   :  { %1547 = vmatpush3.bf16.msra.mxu0 %v1807_v7 }
 0x2f2   :  { %1548 = vmatprep.subr.bf16.mxu0 %v1738_v0 }
 0x2f5   :  { %1550 = vmatpush3.bf16.msra.mxu0 %v1821_v13 }
 0x2f6   :  { %1551 = vmatprep.subr.bf16.mxu0 %v1738_v0 }
 0x2f9   :  { %1553 = vmatpush3.bf16.msra.mxu0 %v1829_v16 }
 0x2fa   :  { %1554 = vmatprep.subr.bf16.mxu0 %v1738_v0 }
 0x2fd   :  { %1556 = vmatpush3.bf16.msra.mxu0 %v1835_v19 }
 0x2fe   :  { %1557 = vmatprep.subr.bf16.mxu0 %v1738_v0 }
 0x301   :  { %1559 = vmatpush3.bf16.msra.mxu0 %v1841_v22 }
 0x302   :  { %1560 = vmatprep.subr.bf16.mxu0 %v1738_v0 }
 0x305   :  { %1562 = vmatpush3.bf16.msra.mxu0 %v1847_v25 }
 0x306   :  { %1563 = vmatprep.subr.bf16.mxu0 %v1738_v0 }
 0x309   :  { %1565 = vmatpush3.bf16.msra.mxu0 %v1853_v28 }
 0x30a   :  { %1590 = vmatprep.subr.bf16.mxu0 %v1738_v0 }
 0x3bf   :  { %v512_v60 = vpop.f32.mrb[10].mxu0 }
 0x3c0   :  { %v516_v61 = vadd.f32 %v512_v60, %v179_v59  ;;  %v1246_v62 = vpop.f32.mrb[11].mxu0 }
 0x3c2   :  { %1652 = vtanh.f32 %v516_v61 }
 0x3cc   :  { %v1653_v63 = vpop.eup %1652 }
 0x3cd   :  { %1280 = vmatmul.mubr.f32.vlgmr.msra.gmra.mrb[4].mxu1 %v1653_v63 }
 0x3ce   :  { %1568 = vmatpush3.bf16.msra.mxu1 %v1804_v5  ;;  %1349 = vmatprep.mubr.msk.f32.mxu1 %vm1739_vm0, %v1740_v1 }
 0x3cf   :  { %1569 = vmatprep.subr.bf16.mxu1 %v1738_v0 }
 0x3d2   :  { %1571 = vmatpush3.bf16.msra.mxu1 %v1807_v7 }
 0x3d3   :  { %1572 = vmatprep.subr.bf16.mxu1 %v1738_v0 }
 0x3d6   :  { %1574 = vmatpush3.bf16.msra.mxu1 %v1821_v13 }
 0x3d7   :  { %1575 = vmatprep.subr.bf16.mxu1 %v1738_v0 }
 0x3da   :  { %1577 = vmatpush3.bf16.msra.mxu1 %v1829_v16 }
 0x3db   :  { %1578 = vmatprep.subr.bf16.mxu1 %v1738_v0 }
 0x3de   :  { %1580 = vmatpush3.bf16.msra.mxu1 %v1835_v19 }
 0x3df   :  { %1581 = vmatprep.subr.bf16.mxu1 %v1738_v0 }
 0x3e2   :  { %1583 = vmatpush3.bf16.msra.mxu1 %v1841_v22 }
 0x3e3   :  { %1584 = vmatprep.subr.bf16.mxu1 %v1738_v0 }
 0x3e6   :  { %1586 = vmatpush3.bf16.msra.mxu1 %v1847_v25 }
 0x3e7   :  { %1587 = vmatprep.subr.bf16.mxu1 %v1738_v0 }
 0x3ea   :  { %1589 = vmatpush3.bf16.msra.mxu1 %v1853_v28 }
 0x3eb   :  { %1614 = vmatprep.subr.bf16.mxu1 %v1738_v0 }
 0x4a0   :  { %v585_v3 = vpop.f32.mrb[4].mxu1 }
 0x4a1   :  { %v589_v4 = vadd.f32 %v585_v3, %v184_v2  ;;  %v1281_v6 = vpop.f32.mrb[5].mxu1 }
 0x4a3   :  { %1654 = vtanh.f32 %v589_v4 }
 0x4ad   :  { %v1655_v8 = vpop.eup %1654 }
 0x4ae   :  { %1315 = vmatmul.mubr.f32.vlgmr.msra.gmra.mrb[12].mxu0 %v1655_v8 }
 0x4af   :  { %1592 = vmatpush3.bf16.msra.mxu0 %v1804_v5  ;;  %1384 = vmatprep.mubr.msk.f32.mxu0 %vm1739_vm0, %v1740_v1  ;;  %v189_v5 = vadd.f32 %v1933_v45, %v1912_v37 }
 0x4b0   :  { %1593 = vmatprep.subr.bf16.mxu0 %v1738_v0 }
 0x4b3   :  { %1595 = vmatpush3.bf16.msra.mxu0 %v1807_v7 }
 0x4b4   :  { %1596 = vmatprep.subr.bf16.mxu0 %v1738_v0 }
 0x4b7   :  { %1598 = vmatpush3.bf16.msra.mxu0 %v1821_v13  ;;  %v811_v13 = vld [vmem:[#allocation6 + $0x8] sm:$0xff] }
 0x4b8   :  { %1599 = vmatprep.subr.bf16.mxu0 %v1738_v0  ;;  %v1615_v15 = vpack.c.bf16 %v811_v13, %v810_v12 }
 0x4bb   :  { %1601 = vmatpush3.bf16.msra.mxu0 %v1829_v16  ;;  %v813_v16 = vld [vmem:[#allocation6 + $0x18] sm:$0xff] }
 0x4bc   :  { %1602 = vmatprep.subr.bf16.mxu0 %v1738_v0  ;;  %v1618_v17 = vpack.c.bf16 %v813_v16, %v812_v14 }
 0x4bf   :  { %1604 = vmatpush3.bf16.msra.mxu0 %v1835_v19  ;;  %v815_v19 = vld [vmem:[#allocation6 + $0x28] sm:$0xff] }
 0x4c0   :  { %1605 = vmatprep.subr.bf16.mxu0 %v1738_v0  ;;  %v1621_v20 = vpack.c.bf16 %v815_v19, %v814_v18 }
 0x4c3   :  { %1607 = vmatpush3.bf16.msra.mxu0 %v1841_v22  ;;  %v817_v22 = vld [vmem:[#allocation6 + $0x38] sm:$0xff] }
 0x4c4   :  { %1608 = vmatprep.subr.bf16.mxu0 %v1738_v0  ;;  %v1624_v23 = vpack.c.bf16 %v817_v22, %v816_v21 }
 0x4c7   :  { %1610 = vmatpush3.bf16.msra.mxu0 %v1847_v25 }
 0x4c8   :  { %1611 = vmatprep.subr.bf16.mxu0 %v1738_v0 }
 0x4cb   :  { %1613 = vmatpush3.bf16.msra.mxu0 %v1853_v28 }
 0x581   :  { %v658_v7 = vpop.f32.mrb[12].mxu0 }
 0x582   :  { %v662_v9 = vadd.f32 %v658_v7, %v189_v5  ;;  %v1316_v10 = vpop.f32.mrb[13].mxu0 }
 0x584   :  { %1656 = vtanh.f32 %v662_v9 }
 0x58e   :  { %v1657_v11 = vpop.eup %1656 }
 0x58f   :  { %1350 = vmatmul.mubr.f32.vlgmr.msra.gmra.mrb[6].mxu1 %v1657_v11 }
 0x590   :  { %1419 = vmatprep.mubr.msk.f32.mxu1 %vm1739_vm0, %v1740_v1  ;;  %1616 = vmatpush3.bf16.msra.mxu1 %v1615_v15  ;;  %v818_v1 = vld [vmem:[#allocation6 + $0x40] sm:$0xff] }
 0x591   :  { %1617 = vmatprep.subr.bf16.mxu1 %v1738_v0  ;;  %v1627_v25 = vpack.c.bf16 %v819_v24, %v818_v1 }
 0x594   :  { %1619 = vmatpush3.bf16.msra.mxu1 %v1618_v17 }
 0x595   :  { %1620 = vmatprep.subr.bf16.mxu1 %v1738_v0 }
 0x598   :  { %1622 = vmatpush3.bf16.msra.mxu1 %v1621_v20 }
 0x599   :  { %1623 = vmatprep.subr.bf16.mxu1 %v1738_v0 }
 0x59c   :  { %1625 = vmatpush3.bf16.msra.mxu1 %v1624_v23 }
 0x59d   :  { %1626 = vmatprep.subr.bf16.mxu1 %v1738_v0 }
 0x5a0   :  { %1628 = vmatpush3.bf16.msra.mxu1 %v1627_v25 }
 0x5a1   :  { %1629 = vmatprep.subr.bf16.mxu1 %v1738_v0 }
 0x5a4   :  { %1631 = vmatpush3.bf16.msra.mxu1 %v1630_v33 }
 0x5a5   :  { %1632 = vmatprep.subr.bf16.mxu1 %v1738_v0 }
 0x5a8   :  { %1634 = vmatpush3.bf16.msra.mxu1 %v1633_v36 }
 0x5a9   :  { %1635 = vmatprep.subr.bf16.mxu1 %v1738_v0 }
 0x5ac   :  { %1637 = vmatpush3.bf16.msra.mxu1 %v1636_v40 }
 0x662   :  { %v731_v27 = vpop.f32.mrb[6].mxu1 }
 0x663   :  { %v735_v28 = vadd.f32 %v731_v27, %v194_v26  ;;  %v1351_v29 = vpop.f32.mrb[7].mxu1 }
 0x665   :  { %1658 = vtanh.f32 %v735_v28 }
 0x66f   :  { %v1659_v30 = vpop.eup %1658 }
 0x670   :  { %1385 = vmatmul.mubr.f32.vlgmr.msra.gmra.mrb[14].mxu0 %v1659_v30 }
 0x743   :  { %v804_v42 = vpop.f32.mrb[14].mxu0 }
 0x744   :  { %v808_v43 = vadd.f32 %v804_v42, %v199_v41  ;;  %v1386_v44 = vpop.f32.mrb[15].mxu0 }
 0x746   :  { %1660 = vtanh.f32 %v808_v43 }
 0x750   :  { %v1661_v45 = vpop.eup %1660 }
 0x751   :  { %1420 = vmatmul.mubr.f32.vlgmr.msra.gmra.mrb[8].mxu1 %v1661_v45 }
 0x824   :  { %v899_v48 = vpop.f32.mrb[8].mxu1 }
 0x825   :  { %v900_v49 = vadd.f32 %v930_v46, %v899_v48  ;;  %v1421_v50 = vpop.f32.mrb[9].mxu1 }
 0x827   :  { %903 = vst [vmem:[#allocation8] sm:$0xff] %v900_v49 }
 0x828   :  { %1717 = shalt.err (!%p1714_p6)
}
 0x829   :  { %s1718_s2 = scalar_lea.hbm %s2053_s6, 128 }
 0x82a   :  { %p1719_p7 = scmp.ne.s32.totalorder %s2053_s6, %s1718_s2  ;;  %p1722_p8 = scmp.lt.u32.totalorder %s1718_s2, %s2053_s6 }
 0x82c   :  { %p1724_p9 = pnand %p1722_p8, %p1719_p7 }
 0x82e   :  { %1727 = shalt.err (!%p1724_p9)
}
 0x82f   :  { %913 = dma.vmem_to_hbm [thread:$0]  %s911_s17, 128, %s2053_s6, [#allocation5]  }
 0x830   :  { %1732 = dma.done.wait [#allocation5], 128  }
 0x831   :  { %1733 = vsyncadd [#allocation5], 4294967168 }
 0x832   :  { %917 = vsyncpa [#allocation4], 1 }
 0x833   :  { %918 = vsyncpa [#allocation7], 1 }
 0x834   :  { %919 = vsyncpa [#allocation5], 1 }

</bundles_post_ra>
